<compile_context>
chip_gen: v7x
topology: tpu7x:2x2x1
jax: 0.10.0
libtpu: 0.0.40
codegen_flags: <defaults>
</compile_context>

<pallas_src>
import jax
import jax.numpy as jnp
from jax.experimental import pallas as pl
from jax.experimental.pallas import tpu as pltpu

NC_PAD = 128  # lane-dense padded class dimension


def init_params(key, c_in, feature_size, num_classes, k=3):
    k1, k2, k3, k4 = jax.random.split(key, 4)
    conv_w = jax.random.normal(k1, (feature_size, c_in, k, k), jnp.float32) * 0.1
    conv_b = jax.random.normal(k2, (feature_size,), jnp.float32) * 0.1
    cls_w = jax.random.normal(k3, (num_classes, feature_size), jnp.float32) * 0.1
    cls_b = jax.random.normal(k4, (num_classes,), jnp.float32) * 0.1
    return conv_w, conv_b, cls_w, cls_b


def _pick_spatial_tile(hw, max_tile):
    """Largest divisor of hw that is <= max_tile; fall back to full extent if not sublane-aligned."""
    t = min(max_tile, hw)
    while t > 0 and hw % t != 0:
        t -= 1
    if t % 8 != 0 and t != hw:
        t = hw  # full-extent block is always legal
    return t


def simple_model_forward(x_nchw, params, tile_hw=512):
    conv_w, conv_b, cls_w, cls_b = params
    B, C, H, W = x_nchw.shape
    F = conv_w.shape[0]
    K = conv_w.shape[2]
    num_classes = cls_w.shape[0]
    pad = K // 2
    HW = H * W
    CKK = K * K * C

    tile = _pick_spatial_tile(HW, tile_hw)
    T = HW // tile
    inv_hw = 1.0 / float(HW)

    # ---- glue: NCHW -> NHWC, zero-pad, im2col (kk-major, c-minor), cast to bf16 ----
    x = jnp.transpose(x_nchw, (0, 2, 3, 1)).astype(jnp.float32)        # (B, H, W, C)
    xp = jnp.pad(x, ((0, 0), (pad, pad), (pad, pad), (0, 0)))
    patches = jnp.stack(
        [xp[:, i:i + H, j:j + W, :] for i in range(K) for j in range(K)], axis=3
    )                                                                   # (B, H, W, K*K, C)
    patches = patches.reshape(B, HW, CKK).astype(jnp.bfloat16)

    # conv weight (F, C, K, K) -> (K, K, C, F) -> (CKK, F), matching patch layout
    w_mat = jnp.transpose(conv_w, (2, 3, 1, 0)).reshape(CKK, F).astype(jnp.bfloat16)
    b_row = conv_b.reshape(1, F).astype(jnp.float32)

    # classifier weights: PyTorch Linear stores (out, in); kernel wants (in, out), padded to 128 lanes
    cls_w_p = jnp.zeros((F, NC_PAD), jnp.bfloat16).at[:, :num_classes].set(
        cls_w.T.astype(jnp.bfloat16))
    cls_b_p = jnp.zeros((1, NC_PAD), jnp.float32).at[:, :num_classes].set(
        cls_b.astype(jnp.float32))

    def fused_kernel(patches_ref, w_ref, b_ref, cw_ref, cb_ref, out_ref, acc_ref):
        t = pl.program_id(1)

        @pl.when(t == 0)
        def _():
            acc_ref[...] = jnp.zeros_like(acc_ref)

        # conv-as-matmul (bf16 in, f32 acc) + bias + ReLU for this spatial tile
        x_tile = patches_ref[0]                                  # (tile, CKK) bf16
        conv = jnp.dot(x_tile, w_ref[...], preferred_element_type=jnp.float32)
        conv = jnp.maximum(conv + b_ref[...], 0.0)               # (tile, F) f32

        # GAP partial sum in f32 scratch (scale applied once at the end)
        acc_ref[...] += jnp.sum(conv, axis=0, keepdims=True)     # (1, F)

        @pl.when(t == pl.num_programs(1) - 1)
        def _():
            pooled = (acc_ref[...] * inv_hw).astype(jnp.bfloat16)            # (1, F)
            logits = jnp.dot(pooled, cw_ref[...],
                             preferred_element_type=jnp.float32) + cb_ref[...]  # (1, NC_PAD)
            out_ref[...] = logits.reshape(1, 1, NC_PAD)

    out_pad = pl.pallas_call(
        fused_kernel,
        out_shape=jax.ShapeDtypeStruct((B, 1, NC_PAD), jnp.float32),
        grid=(B, T),
        in_specs=[
            pl.BlockSpec((1, tile, CKK), lambda b, t: (b, t, 0)),   # patches tile
            pl.BlockSpec((CKK, F), lambda b, t: (0, 0)),            # conv weight (resident)
            pl.BlockSpec((1, F), lambda b, t: (0, 0)),              # conv bias
            pl.BlockSpec((F, NC_PAD), lambda b, t: (0, 0)),         # classifier weight
            pl.BlockSpec((1, NC_PAD), lambda b, t: (0, 0)),         # classifier bias
        ],
        out_specs=pl.BlockSpec((1, 1, NC_PAD), lambda b, t: (b, 0, 0)),
        scratch_shapes=[pltpu.VMEM((1, F), jnp.float32)],           # f32 GAP accumulator
        compiler_params=pltpu.CompilerParams(
            dimension_semantics=("parallel", "arbitrary")),
    )(patches, w_mat, b_row, cls_w_p, cls_b_p)

    return out_pad[:, 0, :num_classes]


def _reference_forward(x_nchw, params):
    """Pure-JAX f32 reference for correctness checking."""
    conv_w, conv_b, cls_w, cls_b = params
    B, C, H, W = x_nchw.shape
    K = conv_w.shape[2]
    pad = K // 2
    x = jnp.transpose(x_nchw, (0, 2, 3, 1)).astype(jnp.float32)
    xp = jnp.pad(x, ((0, 0), (pad, pad), (pad, pad), (0, 0)))
    patches = jnp.stack(
        [xp[:, i:i + H, j:j + W, :] for i in range(K) for j in range(K)], axis=3
    ).reshape(B, H * W, K * K * C)
    w_mat = jnp.transpose(conv_w, (2, 3, 1, 0)).reshape(K * K * C, -1)
    conv = jnp.maximum(jnp.einsum("bpk,kf->bpf", patches, w_mat) + conv_b, 0.0)
    pooled = jnp.mean(conv, axis=1)
    return pooled @ cls_w.T + cls_b


if __name__ == "__main__":
    key = jax.random.PRNGKey(0)
    k_x, k_p = jax.random.split(key)

    B, C, H, W = 2, 4, 16, 16
    feature_size = 32
    num_classes = 6

    x = jax.random.normal(k_x, (B, C, H, W), jnp.float32)
    params = init_params(k_p, C, feature_size, num_classes)

    # tile_hw=128 at this toy size exercises the multi-step reduction / accumulator path;
    # at real image sizes the default (512+) amortizes per-step overhead better.
    out = simple_model_forward(x, params, tile_hw=128)
    out = jax.block_until_ready(out)

    assert out.shape == (B, num_classes), out.shape
    assert out.dtype == jnp.float32

    ref = jax.block_until_ready(_reference_forward(x, params))
    assert jnp.allclose(out, ref, rtol=1e-1, atol=5e-2), (out, ref)

    print("KERNEL_OK")
</pallas_src>

<mosaic_0001>
module attributes {stable_mosaic.version = 11 : i64} {
  func.func @fused_kernel(%arg0: i32, %arg1: i32, %arg2: memref<1x128x36xbf16, #tpu.memory_space<vmem>>, %arg3: memref<36x32xbf16, #tpu.memory_space<vmem>>, %arg4: memref<1x32xf32, #tpu.memory_space<vmem>>, %arg5: memref<32x128xbf16, #tpu.memory_space<vmem>>, %arg6: memref<1x128xf32, #tpu.memory_space<vmem>>, %arg7: memref<1x1x128xf32, #tpu.memory_space<vmem>>, %arg8: memref<1x32xf32, #tpu.memory_space<vmem>>) attributes {dimension_semantics = [#tpu.dimension_semantics<parallel>, #tpu.dimension_semantics<arbitrary>], iteration_bounds = array<i64: 2, 2>, scalar_prefetch = 0 : i64, scratch_operands = 1 : i64, tpu.core_type = #tpu.core_type<tc>, window_params = [{transform_indices = @transform_0, window_bounds = array<i64: 1, 128, 36>}, {pipeline_mode = #tpu.pipeline_mode<synchronous>, transform_indices = @transform_1, window_bounds = array<i64: 36, 32>}, {pipeline_mode = #tpu.pipeline_mode<synchronous>, transform_indices = @transform_2, window_bounds = array<i64: 1, 32>}, {pipeline_mode = #tpu.pipeline_mode<synchronous>, transform_indices = @transform_3, window_bounds = array<i64: 32, 128>}, {pipeline_mode = #tpu.pipeline_mode<synchronous>, transform_indices = @transform_4, window_bounds = array<i64: 1, 128>}, {transform_indices = @transform_5, window_bounds = array<i64: 1, 1, 128>}]} {
    %c0_i32 = arith.constant 0 : i32
    %0 = arith.cmpi eq, %arg1, %c0_i32 : i32
    %1 = arith.extui %0 : i1 to i32
    %c0_i32_0 = arith.constant 0 : i32
    %2 = arith.cmpi ne, %1, %c0_i32_0 : i32
    scf.if %2 {
      %cst_14 = arith.constant 0.000000e+00 : f32
      %20 = vector.broadcast %cst_14 : f32 to vector<1x32xf32>
      %c0_15 = arith.constant 0 : index
      %c0_16 = arith.constant 0 : index
      %21 = vector.load %arg8[%c0_15, %c0_16] : memref<1x32xf32, #tpu.memory_space<vmem>>, vector<1x32xf32>
      tpu.vector_store %arg8[%c0_15, %c0_16], %20 {strides = array<i32>} : memref<1x32xf32, #tpu.memory_space<vmem>>, vector<1x32xf32>,
    } else {
    }
    %c0 = arith.constant 0 : index
    %c0_1 = arith.constant 0 : index
    %c0_2 = arith.constant 0 : index
    %3 = vector.load %arg2[%c0, %c0_1, %c0_2] : memref<1x128x36xbf16, #tpu.memory_space<vmem>>, vector<1x128x36xbf16>
    %4 = vector.shape_cast %3 : vector<1x128x36xbf16> to vector<128x36xbf16>
    %c0_3 = arith.constant 0 : index
    %c0_4 = arith.constant 0 : index
    %5 = vector.load %arg3[%c0_3, %c0_4] : memref<36x32xbf16, #tpu.memory_space<vmem>>, vector<36x32xbf16>
    %cst = arith.constant dense<0.000000e+00> : vector<128x32xf32>
    %6 = tpu.matmul %4, %5, %cst {dimension_numbers = #tpu.dot_dimension_numbers<[1], [0], [0], [1], [0, 0, 1, 1], [], []>} : vector<128x36xbf16>, vector<36x32xbf16>, vector<128x32xf32> -> vector<128x32xf32>
    %c0_5 = arith.constant 0 : index
    %c0_6 = arith.constant 0 : index
    %7 = vector.load %arg4[%c0_5, %c0_6] : memref<1x32xf32, #tpu.memory_space<vmem>>, vector<1x32xf32>
    %8 = vector.broadcast %7 : vector<1x32xf32> to vector<128x32xf32>
    %9 = arith.addf %6, %8 : vector<128x32xf32>
    %cst_7 = arith.constant 0.000000e+00 : f32
    %10 = vector.broadcast %cst_7 : f32 to vector<128x32xf32>
    %11 = arith.maximumf %9, %10 : vector<128x32xf32>
    %c0_8 = arith.constant 0 : index
    %c0_9 = arith.constant 0 : index
    %12 = vector.load %arg8[%c0_8, %c0_9] : memref<1x32xf32, #tpu.memory_space<vmem>>, vector<1x32xf32>
    %cst_10 = arith.constant dense<0.000000e+00> : vector<32xf32>
    %13 = vector.multi_reduction <add>, %11, %cst_10 [0] : vector<128x32xf32> to vector<32xf32>
    %14 = vector.shape_cast %13 : vector<32xf32> to vector<1x32xf32>
    %15 = arith.addf %12, %14 : vector<1x32xf32>
    %c0_11 = arith.constant 0 : index
    %c0_12 = arith.constant 0 : index
    %16 = vector.load %arg8[%c0_11, %c0_12] : memref<1x32xf32, #tpu.memory_space<vmem>>, vector<1x32xf32>
    tpu.vector_store %arg8[%c0_11, %c0_12], %15 {strides = array<i32>} : memref<1x32xf32, #tpu.memory_space<vmem>>, vector<1x32xf32>,
    %c1_i32 = arith.constant 1 : i32
    %17 = arith.cmpi eq, %arg1, %c1_i32 : i32
    %18 = arith.extui %17 : i1 to i32
    %c0_i32_13 = arith.constant 0 : i32
    %19 = arith.cmpi ne, %18, %c0_i32_13 : i32
    scf.if %19 {
      %c0_14 = arith.constant 0 : index
      %c0_15 = arith.constant 0 : index
      %20 = vector.load %arg8[%c0_14, %c0_15] : memref<1x32xf32, #tpu.memory_space<vmem>>, vector<1x32xf32>
      %cst_16 = arith.constant 3.906250e-03 : f32
      %21 = vector.broadcast %cst_16 : f32 to vector<1x32xf32>
      %22 = arith.mulf %20, %21 : vector<1x32xf32>
      %23 = arith.truncf %22 : vector<1x32xf32> to vector<1x32xbf16>
      %c0_17 = arith.constant 0 : index
      %c0_18 = arith.constant 0 : index
      %24 = vector.load %arg5[%c0_17, %c0_18] : memref<32x128xbf16, #tpu.memory_space<vmem>>, vector<32x128xbf16>
      %cst_19 = arith.constant dense<0.000000e+00> : vector<1x128xf32>
      %25 = tpu.matmul %23, %24, %cst_19 {dimension_numbers = #tpu.dot_dimension_numbers<[1], [0], [0], [1], [0, 0, 1, 1], [], []>} : vector<1x32xbf16>, vector<32x128xbf16>, vector<1x128xf32> -> vector<1x128xf32>
      %c0_20 = arith.constant 0 : index
      %c0_21 = arith.constant 0 : index
      %26 = vector.load %arg6[%c0_20, %c0_21] : memref<1x128xf32, #tpu.memory_space<vmem>>, vector<1x128xf32>
      %27 = arith.addf %25, %26 : vector<1x128xf32>
      %28 = vector.shape_cast %27 : vector<1x128xf32> to vector<1x1x128xf32>
      %c0_22 = arith.constant 0 : index
      %c0_23 = arith.constant 0 : index
      %c0_24 = arith.constant 0 : index
      %29 = vector.load %arg7[%c0_22, %c0_23, %c0_24] : memref<1x1x128xf32, #tpu.memory_space<vmem>>, vector<1x1x128xf32>
      tpu.vector_store %arg7[%c0_22, %c0_23, %c0_24], %28 {strides = array<i32>} : memref<1x1x128xf32, #tpu.memory_space<vmem>>, vector<1x1x128xf32>,
    } else {
    }
    return
  }
  func.func @transform_0(%arg0: i32, %arg1: i32) -> (i32, i32, i32) {
    %c0_i32 = arith.constant 0 : i32
    %c0_i32_0 = arith.constant 0 : i32
    return %arg0, %arg1, %c0_i32 : i32, i32, i32
  }
  func.func @transform_1(%arg0: i32, %arg1: i32) -> (i32, i32) {
    %c0_i32 = arith.constant 0 : i32
    %c0_i32_0 = arith.constant 0 : i32
    %c0_i32_1 = arith.constant 0 : i32
    return %c0_i32, %c0_i32_0 : i32, i32
  }
  func.func @transform_2(%arg0: i32, %arg1: i32) -> (i32, i32) {
    %c0_i32 = arith.constant 0 : i32
    %c0_i32_0 = arith.constant 0 : i32
    %c0_i32_1 = arith.constant 0 : i32
    return %c0_i32, %c0_i32_0 : i32, i32
  }
  func.func @transform_3(%arg0: i32, %arg1: i32) -> (i32, i32) {
    %c0_i32 = arith.constant 0 : i32
    %c0_i32_0 = arith.constant 0 : i32
    %c0_i32_1 = arith.constant 0 : i32
    return %c0_i32, %c0_i32_0 : i32, i32
  }
  func.func @transform_4(%arg0: i32, %arg1: i32) -> (i32, i32) {
    %c0_i32 = arith.constant 0 : i32
    %c0_i32_0 = arith.constant 0 : i32
    %c0_i32_1 = arith.constant 0 : i32
    return %c0_i32, %c0_i32_0 : i32, i32
  }
  func.func @transform_5(%arg0: i32, %arg1: i32) -> (i32, i32, i32) {
    %c0_i32 = arith.constant 0 : i32
    %c0_i32_0 = arith.constant 0 : i32
    %c0_i32_1 = arith.constant 0 : i32
    return %arg0, %c0_i32, %c0_i32_0 : i32, i32, i32
  }
}

</mosaic_0001>

<bundles_post_ra>
// kernel: tpu_custom_call.1
= control target key start
LH: loop header
LB: loop body
LE: loop exit
PB: predicated region body
PF: predicated region fallthrough
CT: control target
= control target key end

     0   :  { %10 = vsyncpa [#allocation4], 0  ;;  %s1193_s0 = inlined_call_operand.vmem [shape: bf16[2,256,36], index: 0, kind: input, shape index: {}]   ;;  %s1194_s1 = inlined_call_operand.vmem [shape: bf16[36,32], index: 1, kind: input, shape index: {}]   ;;  %s1195_s2 = inlined_call_operand.vmem [shape: f32[1,32], index: 2, kind: input, shape index: {}]   ;;  %s1196_s3 = inlined_call_operand.vmem [shape: bf16[32,128], index: 3, kind: input, shape index: {}]   ;;  %s1197_s4 = inlined_call_operand.vmem [shape: f32[1,128], index: 4, kind: input, shape index: {}]   ;;  %s1198_s5 = inlined_call_operand.hbm [shape: f32[2,1,128], index: 5, kind: output, shape index: {}]  }
   0x1   :  { %12 = vsyncpa [#allocation4 + $0x1], 0  ;;  %s982_s18 = smov 0   ;;  %s984_s19 = smov 0  }
   0x2   :  { %s986_s20 = smov 0   ;;  %s988_s21 = smov 0  }
   0x3   :  { %s990_s22 = smov 0   ;;  %s992_s23 = smov 0  }
   0x4   :  { %s994_s24 = smov 0   ;;  %s996_s25 = smov 0  }
   0x5 LB: > { %s677_s26 = sadd.s32 4294967295, %s946_s25   ;;  %s678_s27 = sadd.s32 4294967294, %s946_s25   ;;  %s946_s25 = sphi %s996_s25, %s18_s25   ;;  %s942_s24 = sphi %s994_s24, %s1207_s24   ;;  %s938_s23 = sphi %s992_s23, %s1206_s23   ;;  %s934_s22 = sphi %s990_s22, %s1205_s22   ;;  %s930_s21 = sphi %s988_s21, %s1204_s21   ;;  %s926_s20 = sphi %s986_s20, %s1203_s20   ;;  %s922_s19 = sphi %s984_s19, %s1202_s19   ;;  %s918_s18 = sphi %s982_s18, %s1201_s18  }
   0x6   : > { %s27_s28 = sadd.s32 1, %s938_s23  ;;  %s30_s29 = sadd.s32 1, %s942_s24 }
   0x7   : > { %p28_p0 = scmp.ge.s32.totalorder %s27_s28, 2  ;;  %p159_p1 = scmp.ne.s32.totalorder %s926_s20, %s922_s19 }
   0x8   : > { %p160_p2 = scmp.eq.s32.totalorder %s677_s26, 3  ;;  %p165_p4 = scmp.ne.s32.totalorder %s922_s19, %s918_s18 }
   0x9   : > { %s1209_s28 = smov (%p28_p0, %s27_s28), 0  ;;  %s1211_s29 = smov (!%p28_p0, %s30_s29), %s942_s24 }
   0xa   : > { %p1031_p3 = por %p160_p2, %p159_p1  ;;  %p32_p5 = scmp.ge.s32.totalorder %s1211_s29, 2 }
   0xb   : > { %p166_p6 = scmp.eq.s32.totalorder %s678_s27, 3  ;;  %p681_p7 = scmp.ge.s32.totalorder %s946_s25, 1 }
   0xc   : > { %p209_p8 = scmp.lt.s32.totalorder %s946_s25, 5  ;;  %s1213_s29 = smov (%p32_p5, %s1211_s29), 0 }
   0xd   : > { %p1041_p9 = por %p166_p6, %p165_p4  ;;  %s146_s7 = ssub.s32 %s942_s24, %s1213_s29 }
   0xe   : > { %p210_p10 = pnand %p681_p7, %p209_p8  ;;  %s149_s8 = sadd.s32 1, %s926_s20 }
   0xf   : > { %p147_p11 = scmp.eq.s32.totalorder %s146_s7, 0  ;;  %s238_s10 = sand.u32 (!%p210_p10), 1, %s922_s19  }
  0x10   : > { %213 = sbr.rel (%p210_p10) target bundleno = 559 (0x22f), region = 40  ;;  %s682_s11 = sshll.u32 (!%p210_p10), %s930_s21, 4 }
  0x11   : > { %s1049_s9 = scalar_select %p147_p11, %s926_s20, %s149_s8  }
  0x12   : > { %p241_p12 = scmp.lt.s32.totalorder (!%p210_p10), %s934_s22, 1  ;;  %p243_p13 = scmp.lt.s32.totalorder (!%p210_p10), %s682_s11, 31 }
  0x13   : > { %s1062_s27 = scalar_lea.vmem (!%p210_p10), [#allocation3], %s238_s10  ;;  %p685_p0 = scmp.ne.s32.totalorder (!%p210_p10), %s930_s21, 0 }
  0x17   : > { %s242_s12 = scalar_select %p241_p12, %s934_s22, 1 }
  0x18   : > { %s1215_s11 = smov (!%p243_p13, %s682_s11), 31  ;;  %254 = sbr.rel (%p685_p0) target bundleno = 31 (0x1f), region = 44 }
  0x19   : > { %s683_s13 = sshll.u32 %s242_s12, 5  ;;  %vm255_vm0 = vcmask (!%p685_p0), 253952   ;;  %v948_v0 = vmov (!%p685_p0), 0.0  }
  0x1a   : > { %s246_s14 = sadd.s32 %s683_s13, %s1215_s11  ;;  %256 = vst.msk [vmem:[#allocation2] sm:$0x1] (!%p685_p0), %vm255_vm0, %v948_v0 }
  0x1b   : > { %s684_s15 = sshll.u32 %s246_s14, 2 }
  0x1c   : > { %s1058_s26 = scalar_lea.vmem %s1193_s0, %s684_s15 }
  0x1f PF: > { %v839_v1 = vld [vmem:[%s1194_s1] sm:$0xff]   ;;  %v840_v2 = vld [vmem:[%s1194_s1 + $0x8] sm:$0xff]   ;;  %vm340_vm1 = vcmask 293888   ;;  %v841_v3 = vld [vmem:[%s1194_s1 + $0x10] ss:$0 sps:$4 sm:$0x33]  }
  0x20   : > { %727 = vmatprep.subr.bf16.mxu0 %v839_v1  ;;  %v842_v4 = vld [vmem:[%s1058_s26] sm:$0xff]   ;;  %757 = vmatprep.subr.bf16.mxu1 %v839_v1  ;;  %vm365_vm2 = vcmask 1041408   ;;  %v843_v7 = vld [vmem:[%s1058_s26 + $0x8] sm:$0xff]   ;;  %v844_v9 = vld [vmem:[%s1058_s26 + $0x10] sm:$0xff]   ;;  %vm483_vm3 = vcmask 261120   ;;  %vm522_vm4 = vcmask 253952  }
  0x21   : > { %728 = vmatpush3.bf16.msra.mxu0 %v839_v1  ;;  %760 = vmatpush3.bf16.msra.mxu1 %v839_v1  ;;  %v846_v5 = vld [vmem:[%s1058_s26 + $0x20] sm:$0xff]   ;;  %v367_v6 = vsel %vm365_vm2, %v841_v3, 0  ;;  %v847_v8 = vld [vmem:[%s1058_s26 + $0x28] sm:$0xff]   ;;  %v848_v10 = vld [vmem:[%s1058_s26 + $0x30] sm:$0xff]   ;;  %p706_p1 = scmp.ne.s32.totalorder %s930_s21, 1 }
  0x22   : > { %729 = vmatprep.subr.bf16.mxu0 %v840_v2  ;;  %733 = vmatprep.mubr.msk.bf16.mxu0 %vm340_vm1, %v842_v4  ;;  %v845_v11 = vld [vmem:[%s1058_s26 + $0x18] sm:$0xff]   ;;  %v1093_v13 = vld [vmem:[%s1195_s2] ss:$0 sm:$0xff]  ;;  %vm950_vm5 = vmmov (!%p706_p1), 0  }
  0x23   : > { %758 = vmatprep.subr.bf16.mxu1 %v840_v2  ;;  %741 = vmatprep.mubr.msk.bf16.mxu1 %vm340_vm1, %v846_v5  ;;  %v849_v12 = vld [vmem:[%s1058_s26 + $0x38] sm:$0xff]  }
  0x25   : > { %730 = vmatpush3.bf16.msra.mxu0 %v840_v2  ;;  %761 = vmatpush3.bf16.msra.mxu1 %v840_v2 }
  0x26   : > { %763 = vmatprep.subr.msk.bf16.mxu0 %vm365_vm2, %v841_v3  ;;  %764 = vmatprep.subr.msk.bf16.mxu1 %vm365_vm2, %v841_v3 }
  0x29   : > { %732 = vmatpush3.bf16.msra.mxu0 %v367_v6  ;;  %762 = vmatpush3.bf16.msra.mxu1 %v367_v6 }
  0x2c   : > { %734 = vmatmul.mubr.msk.bf16.vlgmr.msra.gmra.mrb[0].mxu0 %vm340_vm1, %v843_v7  ;;  %742 = vmatmul.mubr.msk.bf16.vlgmr.msra.gmra.mrb[0].mxu1 %vm340_vm1, %v847_v8 }
  0x2d   : > { %737 = vmatprep.mubr.msk.bf16.mxu0 %vm340_vm1, %v844_v9  ;;  %745 = vmatprep.mubr.msk.bf16.mxu1 %vm340_vm1, %v848_v10 }
  0x34   : > { %738 = vmatmul.mubr.msk.bf16.gmra.mrb[4].mxu0 %vm340_vm1, %v845_v11  ;;  %746 = vmatmul.mubr.msk.bf16.gmra.mrb[4].mxu1 %vm340_vm1, %v849_v12 }
  0xff   : > { %v735_v14 = vpop.f32.mrb[0].mxu0  ;;  %v743_v15 = vpop.f32.mrb[0].mxu1 }
 0x100   : > { %v403_v16 = vpop.f32.mrb[1].mxu0  ;;  %v435_v17 = vpop.f32.mrb[1].mxu1  ;;  %v412_v18 = vadd.f32 %v735_v14, %v1093_v13  ;;  %v444_v61 = vadd.f32 %v743_v15, %v1093_v13 }
 0x101   : > { %v404_v19 = vadd.f32 %v1093_v13, %v403_v16  ;;  %v736_v20 = vpop.f32.mrb[2].mxu0  ;;  %v744_v21 = vpop.f32.mrb[2].mxu1  ;;  %v436_v44 = vadd.f32 %v1093_v13, %v435_v17 }
 0x102   : > { %v406_v22 = vpop.f32.mrb[3].mxu0  ;;  %v438_v23 = vpop.f32.mrb[3].mxu1  ;;  %v415_v25 = vadd.f32 %v736_v20, %v1093_v13  ;;  %v468_v27 = vmax.f32 %v412_v18, 0.0  ;;  %v447_v63 = vadd.f32 %v744_v21, %v1093_v13  ;;  %v476_v5 = vmax.f32 %v444_v61, 0.0 }
 0x103   : > { %v466_v24 = vmax.f32 %v404_v19, 0.0  ;;  %v407_v26 = vadd.f32 %v1093_v13, %v406_v22  ;;  %v474_v57 = vmax.f32 %v436_v44, 0.0  ;;  %v439_v58 = vadd.f32 %v1093_v13, %v438_v23 }
 0x104   : > { %v469_v30 = vmax.f32 %v415_v25, 0.0  ;;  %v487_v37 = vsel %vm483_vm3, %v468_v27, 0.0  ;;  %v477_v7 = vmax.f32 %v447_v63, 0.0  ;;  %v503_v12 = vsel %vm483_vm3, %v476_v5, 0.0 }
 0x105   : > { %v467_v28 = vmax.f32 %v407_v26, 0.0  ;;  %v484_v29 = vsel %vm483_vm3, %v466_v24, 0.0  ;;  %v499_v1 = vsel %vm483_vm3, %v474_v57, 0.0  ;;  %v475_v2 = vmax.f32 %v439_v58, 0.0 }
 0x106   : > { %v489_v46 = vsel %vm483_vm3, %v469_v30, 0.0  ;;  %v505_v16 = vsel %vm483_vm3, %v477_v7, 0.0 }
 0x107   : > { %v485_v31 = vsel %vm483_vm3, %v467_v28, 0.0  ;;  %v739_v32 = vpop.f32.mrb[4].mxu0  ;;  %v747_v33 = vpop.f32.mrb[4].mxu1  ;;  %v501_v8 = vsel %vm483_vm3, %v475_v2, 0.0 }
 0x108   : > { %v486_v34 = vadd.f32 %v485_v31, %v484_v29  ;;  %v419_v35 = vpop.f32.mrb[5].mxu0  ;;  %v451_v36 = vpop.f32.mrb[5].mxu1  ;;  %v428_v38 = vadd.f32 %v739_v32, %v1093_v13  ;;  %v460_v14 = vadd.f32 %v747_v33, %v1093_v13 }
 0x109   : > { %v420_v39 = vadd.f32 %v1093_v13, %v419_v35  ;;  %v740_v40 = vpop.f32.mrb[6].mxu0  ;;  %v748_v41 = vpop.f32.mrb[6].mxu1  ;;  %v452_v3 = vadd.f32 %v1093_v13, %v451_v36 }
 0x10a   : > { %v488_v42 = vadd.f32 %v487_v37, %v486_v34  ;;  %v422_v43 = vpop.f32.mrb[7].mxu0  ;;  %v454_v45 = vpop.f32.mrb[7].mxu1  ;;  %v431_v48 = vadd.f32 %v740_v40, %v1093_v13  ;;  %v472_v51 = vmax.f32 %v428_v38, 0.0  ;;  %v463_v18 = vadd.f32 %v748_v41, %v1093_v13  ;;  %v850_v37 = vld [vmem:[%s1196_s3] sm:$0xff] (!%p706_p1)  }
 0x10b   : > { %v470_v47 = vmax.f32 %v420_v39, 0.0  ;;  %v423_v49 = vadd.f32 %v1093_v13, %v422_v43  ;;  %v478_v9 = vmax.f32 %v452_v3, 0.0  ;;  %v455_v10 = vadd.f32 %v1093_v13, %v454_v45  ;;  %v482_v13 = vld [vmem:[#allocation2] sm:$0x1]  ;;  %v851_v39 = vld [vmem:[%s1196_s3 + $0x8] sm:$0xff] (!%p706_p1)  }
 0x10c   : > { %v490_v50 = vadd.f32 %v489_v46, %v488_v42  ;;  %v473_v55 = vmax.f32 %v431_v48, 0.0  ;;  %v495_v60 = vsel %vm483_vm3, %v472_v51, 0.0  ;;  %v480_v21 = vmax.f32 %v460_v14, 0.0  ;;  %v535_v43 = vld [vmem:[%s1197_s4] sm:$0x1] (!%p706_p1) }
 0x10d   : > { %v491_v52 = vsel %vm483_vm3, %v470_v47, 0.0  ;;  %v471_v53 = vmax.f32 %v423_v49, 0.0  ;;  %v507_v17 = vsel %vm483_vm3, %v478_v9, 0.0  ;;  %v479_v19 = vmax.f32 %v455_v10, 0.0 }
 0x10e   : > { %v492_v54 = vadd.f32 %v491_v52, %v490_v50  ;;  %v497_v0 = vsel %vm483_vm3, %v473_v55, 0.0  ;;  %v481_v23 = vmax.f32 %v463_v18, 0.0  ;;  %v511_v26 = vsel %vm483_vm3, %v480_v21, 0.0 }
 0x10f   : > { %v493_v56 = vsel %vm483_vm3, %v471_v53, 0.0  ;;  %v509_v24 = vsel %vm483_vm3, %v479_v19, 0.0  ;;  %v949_v38 = vmov (!%p706_p1), 0.0  }
 0x110   : > { %v494_v59 = vadd.f32 %v493_v56, %v492_v54  ;;  %v513_v28 = vsel %vm483_vm3, %v481_v23, 0.0  ;;  %749 = vmatprep.subr.bf16.mxu0 (!%p706_p1), %v949_v38  ;;  %753 = vmatprep.mubr.msk.bf16.mxu0 (!%p706_p1), %vm950_vm5, %v949_v38 }
 0x111   : > { %750 = vmatpush3.bf16.msra.mxu0 (!%p706_p1), %v850_v37 }
 0x112   : > { %v496_v62 = vadd.f32 %v495_v60, %v494_v59  ;;  %751 = vmatprep.subr.bf16.mxu0 (!%p706_p1), %v949_v38 }
 0x114   : > { %v498_v4 = vadd.f32 %v497_v0, %v496_v62 }
 0x115   : > { %752 = vmatpush3.bf16.msra.mxu0 (!%p706_p1), %v851_v39 }
 0x116   : > { %v500_v6 = vadd.f32 %v499_v1, %v498_v4 }
 0x118   : > { %v502_v11 = vadd.f32 %v501_v8, %v500_v6 }
 0x11a   : > { %v504_v15 = vadd.f32 %v503_v12, %v502_v11 }
 0x11c   : > { %v506_v20 = vadd.f32 %v505_v16, %v504_v15 }
 0x11e   : > { %v508_v22 = vadd.f32 %v507_v17, %v506_v20 }
 0x120   : > { %v510_v25 = vadd.f32 %v509_v24, %v508_v22 }
 0x122   : > { %v512_v27 = vadd.f32 %v511_v26, %v510_v25 }
 0x124   : > { %v514_v29 = vadd.f32 %v513_v28, %v512_v27 }
 0x126   : > { %v515_v30 = vrot.slane %v514_v29, 4 }
 0x128   : > { %v516_v31 = vadd.f32 %v515_v30, %v514_v29 }
 0x12a   : > { %v517_v32 = vrot.slane %v516_v31, 2 }
 0x12c   : > { %v518_v33 = vadd.f32 %v517_v32, %v516_v31 }
 0x12e   : > { %v519_v34 = vrot.slane %v518_v33, 1  ;;  %527 = sbr.rel (%p706_p1) target bundleno = 535 (0x217), region = 48 }
 0x130   : > { %v520_v35 = vadd.f32 %v519_v34, %v518_v33 }
 0x132   : > { %v521_v36 = vadd.f32 %v520_v35, %v482_v13 }
 0x134   : > { %523 = vst.msk [vmem:[#allocation2] sm:$0x1] %vm522_vm4, %v521_v36 }
 0x13b   : > { %v528_v40 = vld [vmem:[#allocation2] sm:$0x1] }
 0x13c   : > { %v529_v41 = vmul.f32 0.00390625, %v528_v40 }
 0x13e   : > { %v530_v42 = vpack.c.bf16 %v529_v41, %v529_v41 }
 0x140   : > { %754 = vmatmul.mubr.msk.bf16.vlgmr.msra.gmra.mrb[0].mxu0 %vm483_vm3, %v530_v42 }
 0x213   : > { %v585_v44 = vpop.f32.mrb[0].mxu0 }
 0x214   : > { %v586_v45 = vadd.f32 %v585_v44, %v535_v43  ;;  %v755_v46 = vpop.f32.mrb[1].mxu0 }
 0x215   : > { %v588_v47 = vpop.f32.mrb[2].mxu0 }
 0x216   : > { %591 = vst [vmem:[%s1062_s27] sm:$0x1] %v586_v45  ;;  %v756_v48 = vpop.f32.mrb[3].mxu0 }
 0x217 PF: > { %s710_s12 = sshll.u32 %s934_s22, 4  ;;  %s605_s16 = sshll.u32 %s1062_s27, 4  ;;  %s606_s16 = int_to_ptr.vmem [resolvable:$true] %s605_s16 }
 0x218   : > { %s1143_s15 = scalar_lea.hbm %s1198_s5, %s710_s12  ;;  %s593_s17 = scalar_lea.sflag [#allocation4], %s238_s10 }
 0x219   : > { %s852_s26 = scalar_lea.vmem %s606_s16, 16  ;;  %s951_s7 = smov [#allocation3]  }
 0x21a   : > { %p853_p2 = scmp.ne.s32.totalorder %s606_s16, %s852_s26  ;;  %s856_s8 = sshll.u32 %s951_s7, 4  ;;  %s857_s8 = int_to_ptr.vmem [resolvable:$false] %s856_s8 }
 0x21b   : > { %s858_s21 = scalar_lea.vmem %s857_s8, 32  ;;  %p859_p6 = scmp.lt.s32.totalorder %s606_s16, %s857_s8 }
 0x21c   : > { %p854_p4 = pnand %p853_p2, %p1031_p3  ;;  %p860_p7 = scmp.lt.s32.totalorder %s858_s21, %s852_s26 }
 0x21e   : > { %p855_p5 = pneg %p854_p4  ;;  %p861_p8 = por %p860_p7, %p859_p6 }
 0x220   : > { %p862_p10 = pnand %p861_p8, %p855_p5 }
 0x222   : > { %865 = shalt.err (!%p862_p10)
}
 0x223   : > { %s866_s22 = scalar_lea.hbm %s1143_s15, 16  ;;  %s870_s11 = scalar_lea.hbm %s1198_s5, 32 }
 0x224   : > { %p867_p11 = scmp.ne.s32.totalorder %s1143_s15, %s866_s22  ;;  %p871_p0 = scmp.lt.u32.totalorder %s1143_s15, %s1198_s5 }
 0x225   : > { %p872_p1 = scmp.lt.u32.totalorder %s870_s11, %s866_s22  ;;  %p874_p4 = scmp.lt.u32.totalorder %s866_s22, %s1143_s15 }
 0x226   : > { %p868_p12 = pnand %p867_p11, %p1031_p3 }
 0x227   : > { %p873_p2 = por %p872_p1, %p871_p0 }
 0x228   : > { %p869_p13 = pneg %p868_p12 }
 0x229   : > { %p875_p5 = por %p874_p4, %p873_p2 }
 0x22b   : > { %p876_p6 = pnand %p875_p5, %p869_p13 }
 0x22d   : > { %879 = shalt.err (!%p876_p6)
}
 0x22e   : > { %765 = dma.vmem_to_hbm [thread:$0]  (%p1031_p3), %s606_s16, 16, %s1143_s15, %s593_s17  }
 0x22f PF: > { %p771_p7 = scmp.ge.s32.totalorder %s946_s25, 2  ;;  %s617_s14 = sand.u32 1, %s918_s18  }
 0x230   : > { %s618_s26 = scalar_lea.sflag [#allocation4], %s617_s14 }
 0x231   : > { %p768_p8 = pnand %p771_p7, %p1041_p9 }
 0x233   : > { %913 = dma.done.wait (!%p768_p8), %s618_s26, 16  }
 0x234   : > { %915 = vsyncadd (!%p768_p8), %s618_s26, 4294967280  ;;  %s18_s25 = sadd.s32 1, %s946_s25   ;;  %s1201_s18 = smov %s922_s19 }
 0x235   : > { %p15_p10 = scmp.ge.s32.totalorder %s18_s25, 6   ;;  %s1202_s19 = smov %s926_s20 }
 0x236   : > { %s1203_s20 = smov %s1049_s9  ;;  %s1204_s21 = smov %s938_s23 }
 0x237   : > { %s1205_s22 = smov %s942_s24  ;;  %s1206_s23 = smov %s1209_s28 }
 0x238   : > { %s1207_s24 = smov %s1213_s29  ;;  %17 = sbr.rel (!%p15_p10) target bundleno = 5 (0x5), region = 83 }
 0x23f   :  { %622 = vsyncpa [#allocation4], 1 }
 0x240   :  { %624 = vsyncpa [#allocation4 + $0x1], 1 }

</bundles_post_ra>
